<compile_context>
chip_gen: v7x
topology: tpu7x:2x2x1
jax: 0.10.0
libtpu: 0.0.40
codegen_flags: <defaults>
</compile_context>

<pallas_src>
import functools
import math

import numpy as np
import jax
import jax.numpy as jnp
from jax.experimental import pallas as pl
from jax.experimental.pallas import tpu as pltpu

_EPS = 1e-8
_LANE = 128
_CORE_SPLIT = 2   # >=2-way parallel work for v7x's two TensorCores (no-op on v5e/v6e)


def _repulsive_kernel(iof_ref, jof_ref, code_ref, pos_i_ref, pos_jt_ref,
                      out_ref, acc_ref, *, thr2, n_coord, pairs_per_chunk):
    b = pl.program_id(0)
    c = pl.program_id(1)
    p = pl.program_id(2)
    pair = c * pairs_per_chunk + p
    tm = pos_i_ref.shape[0]
    tn = pos_jt_ref.shape[1]

    @pl.when(p == 0)
    def _():
        acc_ref[...] = jnp.zeros_like(acc_ref)

    # code: 0 = skip (padded slot or AABB-culled), 1 = diagonal tile, 2 = off-diagonal tile
    code = code_ref[b, pair]

    @pl.when(code > 0)
    def _():
        pi = pos_i_ref[...]                 # [t, 8]   xyz in cols 0..2
        pjt = pos_jt_ref[...]               # [8, t]   transposed positions (lane dense)
        d = jnp.zeros((tm, tn), jnp.float32)
        # Per-coordinate VPU distance (no MXU, no |p|^2 - 2<p,q> cancellation).
        # pi[:, k:k+1] is a lane-broadcast, pjt[k:k+1, :] a sublane-broadcast; both are
        # per-tile (outside any loop) and sit under the VALU bound.
        for k in range(n_coord):
            diff = pi[:, k:k + 1] - pjt[k:k + 1, :]
            d = d + diff * diff
        dist = d + jnp.float32(_EPS)
        # +log accumulation (negated once in the wrapper); no diagonal mask here — the
        # exact diagonal contribution N_pad * log(eps) is removed analytically outside.
        contrib = jnp.where(dist <= jnp.float32(thr2), jnp.log(dist), 0.0)
        # Fold lane groups into a [t, 128] register before touching the accumulator
        # (single accumulator RMW per tile, t/128x less VMEM traffic).
        partial = contrib[:, 0:_LANE]
        for g in range(1, tn // _LANE):
            partial = partial + contrib[:, g * _LANE:(g + 1) * _LANE]
        # Diagonal tiles get weight 1/2 so the wrapper's global *2 restores exactly 1x.
        # Scalar factor (0.5 * code) applied on [t,128] only: ~0.25 op/elem, no select.
        factor = jnp.float32(0.5) * code.astype(jnp.float32)
        acc_ref[...] += factor * partial

    @pl.when(p == pl.num_programs(2) - 1)
    def _():
        # single cross-lane reduce per (example, chunk), in the epilogue only
        out_ref[...] = jnp.sum(acc_ref[...], keepdims=True)


def _pick_tile(n_max):
    # Cap the tile at 512 (keeps the scratch + [t,t] temporaries well inside v7x's
    # 32 MiB scoped VMEM); tiles are multiples of 128 so (8,128) layout always holds.
    return int(min(512, -(-n_max // _LANE) * _LANE))


def _spatial_sort(p):
    """Sort vertices along the coordinate of largest spread (tighter tile AABBs)."""
    spread = jnp.max(p, axis=0) - jnp.min(p, axis=0)
    key = jnp.take(p, jnp.argmax(spread), axis=1)
    return p[jnp.argsort(key)]


def _pad_far(p, n_total, threshold):
    """Pad to n_total rows with points spaced > threshold apart and > threshold away
    from the data along x.  Padded rows then only contribute their own diagonal."""
    n, d = p.shape
    extra = n_total - n
    if extra == 0:
        return p
    sep = float(threshold) + 1.0
    pad_x = jnp.max(p[:, 0]) + sep * (1.0 + jnp.arange(extra, dtype=jnp.float32))
    pad = jnp.zeros((extra, d), jnp.float32).at[:, 0].set(pad_x)
    return jnp.concatenate([p, pad], axis=0)


def repulsive_energy_all_pairs(pos, *, threshold, tile):
    """pos: [B, N_pad, D] f32, already sorted/padded with N_pad % tile == 0.
    Returns [B]: per example, sum_{r != c, dist<=thr^2} -log(dist), dist = |p_r-p_c|^2 + eps.
    (Connectivity-edge exclusion is a tiny correction applied by the caller.)"""
    B, N, D = pos.shape
    t = tile
    assert N % t == 0
    G = N // t
    thr2 = float(threshold) * float(threshold)

    # -- static upper-triangular tile-pair table (dead lower triangle never visited) --
    iof_np, jof_np = np.triu_indices(G)
    iof_np = iof_np.astype(np.int32)
    jof_np = jof_np.astype(np.int32)
    P = int(iof_np.shape[0])
    Pc = -(-P // _CORE_SPLIT)               # pairs per parallel chunk
    total = _CORE_SPLIT * Pc

    # -- block-sparse culling: conservative AABB lower bound per tile pair ------------
    boxes = pos.reshape(B, G, t, D)
    lo = boxes.min(axis=2)                  # [B, G, D]
    hi = boxes.max(axis=2)
    gap = jnp.maximum(jnp.maximum(lo[:, iof_np] - hi[:, jof_np],
                                  lo[:, jof_np] - hi[:, iof_np]), 0.0)
    lb_sq = jnp.sum(gap * gap, axis=-1)     # [B, P]
    base = np.where(iof_np == jof_np, 1, 2).astype(np.int32)      # 1 = diag, 2 = off-diag
    live = lb_sq <= jnp.float32(thr2 * (1.0 + 1e-5) + 1e-7)       # keep if in doubt
    codes = jnp.zeros((B, total), jnp.int32).at[:, :P].set(
        jnp.where(live, base[None, :], 0))
    iof = jnp.zeros((total,), jnp.int32).at[:P].set(iof_np)
    jof = jnp.zeros((total,), jnp.int32).at[:P].set(jof_np)

    # -- layout: [t, 8] row blocks and lane-dense transposed [8, t] column blocks -----
    dpad = 8
    pos8 = jnp.zeros((B, N, dpad), jnp.float32).at[:, :, :D].set(pos)
    pos8_t = jnp.transpose(pos8, (0, 2, 1))

    kernel = functools.partial(_repulsive_kernel, thr2=thr2, n_coord=D,
                               pairs_per_chunk=Pc)
    out = pl.pallas_call(
        kernel,
        out_shape=jax.ShapeDtypeStruct((B, _CORE_SPLIT, 1, 1), jnp.float32),
        grid_spec=pltpu.PrefetchScalarGridSpec(
            num_scalar_prefetch=3,
            grid=(B, _CORE_SPLIT, Pc),
            in_specs=[
                pl.BlockSpec((None, t, dpad),
                             lambda b, c, p, io, jo, cd: (b, io[c * Pc + p], 0)),
                pl.BlockSpec((None, dpad, t),
                             lambda b, c, p, io, jo, cd: (b, 0, jo[c * Pc + p])),
            ],
            out_specs=pl.BlockSpec((None, None, 1, 1),
                                   lambda b, c, p, io, jo, cd: (b, c, 0, 0)),
            scratch_shapes=[pltpu.VMEM((t, _LANE), jnp.float32)],
        ),
        compiler_params=pltpu.CompilerParams(
            dimension_semantics=("parallel", "parallel", "arbitrary"),
            vmem_limit_bytes=32 * 1024 * 1024),
    )(iof, jof, codes, pos8, pos8_t)

    s = jnp.sum(out[:, :, 0, 0], axis=1)    # [B]; s = 0.5 * sum_{all r,c} log(dist)*keep
    pair_sums = -2.0 * s
    if np.float32(_EPS) <= np.float32(thr2):
        # every diagonal entry (incl. padded rows) passed the threshold test in-kernel
        pair_sums = pair_sums - jnp.float32(N) * jnp.float32(-math.log(_EPS))
    return pair_sums


def _edge_correction(pred_pos, edges, thr2):
    """Sum of -log(dist) over the distinct directed, non-diagonal pairs excluded by the
    connectivity edges (both orientations), restricted to dist <= thr^2.  O(E log E)."""
    edges = jnp.asarray(edges, jnp.int32)
    if edges.shape[0] == 0:
        return jnp.float32(0.0)
    rows = jnp.concatenate([edges[:, 0], edges[:, 1]])
    cols = jnp.concatenate([edges[:, 1], edges[:, 0]])
    order = jnp.lexsort((cols, rows))
    r = rows[order]
    c = cols[order]
    dup = jnp.concatenate([jnp.zeros((1,), bool),
                           (r[1:] == r[:-1]) & (c[1:] == c[:-1])])
    d = jnp.sum(jnp.square(pred_pos[r] - pred_pos[c]), axis=-1) + _EPS
    valid = (~dup) & (r != c) & (d <= thr2)
    return jnp.sum(jnp.where(valid, -jnp.log(d), 0.0))


def criterion_forward(pred_pos_batch, edges_batch, *, weight, threshold):
    """Mirrors Criterion.forward: mean over examples of per-example repulsive losses."""
    thr2 = float(threshold) * float(threshold)
    pred_pos_batch = [jnp.asarray(p, jnp.float32) for p in pred_pos_batch]
    n_max = max(int(p.shape[0]) for p in pred_pos_batch)
    t = _pick_tile(n_max)
    n_pad = -(-n_max // t) * t
    # Variable vertex counts are handled by pad-to-max-N (single batched launch);
    # sorting only permutes the permutation-invariant all-pairs sum.
    pos = jnp.stack([_pad_far(_spatial_sort(p), n_pad, threshold)
                     for p in pred_pos_batch])                       # [B, n_pad, 3]
    pair_sums = repulsive_energy_all_pairs(pos, threshold=threshold, tile=t)
    corr = jnp.stack([_edge_correction(p, e, thr2)
                      for p, e in zip(pred_pos_batch, edges_batch)])
    losses = (pair_sums - corr) * jnp.float32(weight)
    return dict(loss=jnp.mean(losses))


def _reference_single(pred_pos, edges, weight, threshold):
    n = pred_pos.shape[0]
    dist = jnp.sum(jnp.square(pred_pos[None] - pred_pos[:, None]), -1) + _EPS
    mask = jnp.ones_like(dist)
    mask = jnp.where(dist > threshold * threshold, 0.0, mask)
    mask = mask.at[edges[:, 0], edges[:, 1]].set(0.0)
    mask = mask.at[edges[:, 1], edges[:, 0]].set(0.0)
    mask = mask.at[jnp.arange(n), jnp.arange(n)].set(0.0)
    return jnp.sum(-jnp.log(dist) * mask) * weight


if __name__ == "__main__":
    key = jax.random.PRNGKey(0)
    B, N, E = 2, 128, 16          # 2 graphs, 128 cloth vertices, 16 connectivity edges each
    weight, threshold = 1.0, 0.15

    pred_pos_batch, edges_batch = [], []
    for _ in range(B):
        key, kp, ke = jax.random.split(key, 3)
        pred_pos_batch.append(jax.random.uniform(kp, (N, 3), jnp.float32) * 0.5)
        edges_batch.append(jax.random.randint(ke, (E, 2), 0, N, dtype=jnp.int32))

    out = criterion_forward(pred_pos_batch, edges_batch,
                            weight=weight, threshold=threshold)
    loss = jax.block_until_ready(out["loss"])

    # sanity check against a pure-JAX reference of the torch semantics
    ref = sum(_reference_single(p, e, weight, threshold)
              for p, e in zip(pred_pos_batch, edges_batch)) / B
    ref = jax.block_until_ready(ref)
    assert jnp.allclose(loss, ref, rtol=1e-3, atol=1e-2), (loss, ref)

    print("KERNEL_OK")
</pallas_src>

<mosaic_0001>
module attributes {stable_mosaic.version = 11 : i64} {
  func.func @_repulsive_kernel(%arg0: i32, %arg1: i32, %arg2: i32, %arg3: memref<2xi32, #tpu.memory_space<smem>>, %arg4: memref<2xi32, #tpu.memory_space<smem>>, %arg5: memref<2x2xi32, #tpu.memory_space<smem>>, %arg6: memref<1x128x8xf32, #tpu.memory_space<vmem>>, %arg7: memref<1x8x128xf32, #tpu.memory_space<vmem>>, %arg8: memref<1x1x1x1xf32, #tpu.memory_space<vmem>>, %arg9: memref<128x128xf32, #tpu.memory_space<vmem>>) attributes {dimension_semantics = [#tpu.dimension_semantics<parallel>, #tpu.dimension_semantics<parallel>, #tpu.dimension_semantics<arbitrary>], iteration_bounds = array<i64: 2, 2, 1>, scalar_prefetch = 3 : i64, scratch_operands = 1 : i64, tpu.core_type = #tpu.core_type<tc>, window_params = [{transform_indices = @transform_0, window_bounds = array<i64: 1, 128, 8>}, {transform_indices = @transform_1, window_bounds = array<i64: 1, 8, 128>}, {transform_indices = @transform_2, window_bounds = array<i64: 1, 1, 1, 1>}]} {
    %c1_i32 = arith.constant 1 : i32
    %0 = arith.muli %arg1, %c1_i32 : i32
    %1 = arith.addi %0, %arg2 : i32
    %c0_i32 = arith.constant 0 : i32
    %2 = arith.cmpi eq, %arg2, %c0_i32 : i32
    %3 = arith.extui %2 : i1 to i32
    %c0_i32_0 = arith.constant 0 : i32
    %4 = arith.cmpi ne, %3, %c0_i32_0 : i32
    scf.if %4 {
      %cst = arith.constant 0.000000e+00 : f32
      %14 = vector.broadcast %cst : f32 to vector<128x128xf32>
      %c0 = arith.constant 0 : index
      %c0_5 = arith.constant 0 : index
      %15 = vector.load %arg9[%c0, %c0_5] : memref<128x128xf32, #tpu.memory_space<vmem>>, vector<128x128xf32>
      tpu.vector_store %arg9[%c0, %c0_5], %14 {strides = array<i32>} : memref<128x128xf32, #tpu.memory_space<vmem>>, vector<128x128xf32>,
    } else {
    }
    %5 = arith.index_cast %arg0 : i32 to index
    %6 = arith.index_cast %1 : i32 to index
    %7 = memref.load %arg5[%5, %6] : memref<2x2xi32, #tpu.memory_space<smem>>
    %c0_i32_1 = arith.constant 0 : i32
    %8 = arith.cmpi sgt, %7, %c0_i32_1 : i32
    %9 = arith.extui %8 : i1 to i32
    %c0_i32_2 = arith.constant 0 : i32
    %10 = arith.cmpi ne, %9, %c0_i32_2 : i32
    scf.if %10 {
      %c0 = arith.constant 0 : index
      %c0_5 = arith.constant 0 : index
      %c0_6 = arith.constant 0 : index
      %14 = vector.load %arg6[%c0, %c0_5, %c0_6] : memref<1x128x8xf32, #tpu.memory_space<vmem>>, vector<1x128x8xf32>
      %15 = vector.shape_cast %14 : vector<1x128x8xf32> to vector<128x8xf32>
      %c0_7 = arith.constant 0 : index
      %c0_8 = arith.constant 0 : index
      %c0_9 = arith.constant 0 : index
      %16 = vector.load %arg7[%c0_7, %c0_8, %c0_9] : memref<1x8x128xf32, #tpu.memory_space<vmem>>, vector<1x8x128xf32>
      %17 = vector.shape_cast %16 : vector<1x8x128xf32> to vector<8x128xf32>
      %cst = arith.constant 0.000000e+00 : f32
      %18 = vector.broadcast %cst : f32 to vector<128x128xf32>
      %19 = vector.extract_strided_slice %15 {offsets = [0, 0], sizes = [128, 1], strides = [1, 1]} : vector<128x8xf32> to vector<128x1xf32>
      %20 = vector.extract_strided_slice %17 {offsets = [0, 0], sizes = [1, 128], strides = [1, 1]} : vector<8x128xf32> to vector<1x128xf32>
      %21 = vector.broadcast %19 : vector<128x1xf32> to vector<128x128xf32>
      %22 = vector.broadcast %20 : vector<1x128xf32> to vector<128x128xf32>
      %23 = arith.subf %21, %22 : vector<128x128xf32>
      %24 = arith.mulf %23, %23 : vector<128x128xf32>
      %25 = arith.addf %18, %24 : vector<128x128xf32>
      %26 = vector.extract_strided_slice %15 {offsets = [0, 1], sizes = [128, 1], strides = [1, 1]} : vector<128x8xf32> to vector<128x1xf32>
      %27 = vector.extract_strided_slice %17 {offsets = [1, 0], sizes = [1, 128], strides = [1, 1]} : vector<8x128xf32> to vector<1x128xf32>
      %28 = vector.broadcast %26 : vector<128x1xf32> to vector<128x128xf32>
      %29 = vector.broadcast %27 : vector<1x128xf32> to vector<128x128xf32>
      %30 = arith.subf %28, %29 : vector<128x128xf32>
      %31 = arith.mulf %30, %30 : vector<128x128xf32>
      %32 = arith.addf %25, %31 : vector<128x128xf32>
      %33 = vector.extract_strided_slice %15 {offsets = [0, 2], sizes = [128, 1], strides = [1, 1]} : vector<128x8xf32> to vector<128x1xf32>
      %34 = vector.extract_strided_slice %17 {offsets = [2, 0], sizes = [1, 128], strides = [1, 1]} : vector<8x128xf32> to vector<1x128xf32>
      %35 = vector.broadcast %33 : vector<128x1xf32> to vector<128x128xf32>
      %36 = vector.broadcast %34 : vector<1x128xf32> to vector<128x128xf32>
      %37 = arith.subf %35, %36 : vector<128x128xf32>
      %38 = arith.mulf %37, %37 : vector<128x128xf32>
      %39 = arith.addf %32, %38 : vector<128x128xf32>
      %cst_10 = arith.constant 9.99999993E-9 : f32
      %40 = vector.broadcast %cst_10 : f32 to vector<128x128xf32>
      %41 = arith.addf %39, %40 : vector<128x128xf32>
      %cst_11 = arith.constant 2.250000e-02 : f32
      %42 = vector.broadcast %cst_11 : f32 to vector<128x128xf32>
      %43 = arith.cmpf ole, %41, %42 : vector<128x128xf32>
      %44 = math.log %41 : vector<128x128xf32>
      %cst_12 = arith.constant 0.000000e+00 : f32
      %45 = vector.broadcast %cst_12 : f32 to vector<128x128xf32>
      %46 = arith.select %43, %44, %45 : vector<128x128xi1>, vector<128x128xf32>
      %47 = arith.sitofp %7 : i32 to f32
      %cst_13 = arith.constant 5.000000e-01 : f32
      %48 = arith.mulf %cst_13, %47 : f32
      %c0_14 = arith.constant 0 : index
      %c0_15 = arith.constant 0 : index
      %49 = vector.load %arg9[%c0_14, %c0_15] : memref<128x128xf32, #tpu.memory_space<vmem>>, vector<128x128xf32>
      %50 = vector.broadcast %48 : f32 to vector<128x128xf32>
      %51 = arith.mulf %50, %46 : vector<128x128xf32>
      %52 = arith.addf %49, %51 : vector<128x128xf32>
      %c0_16 = arith.constant 0 : index
      %c0_17 = arith.constant 0 : index
      %53 = vector.load %arg9[%c0_16, %c0_17] : memref<128x128xf32, #tpu.memory_space<vmem>>, vector<128x128xf32>
      tpu.vector_store %arg9[%c0_16, %c0_17], %52 {strides = array<i32>} : memref<128x128xf32, #tpu.memory_space<vmem>>, vector<128x128xf32>,
    } else {
    }
    %c0_i32_3 = arith.constant 0 : i32
    %11 = arith.cmpi eq, %arg2, %c0_i32_3 : i32
    %12 = arith.extui %11 : i1 to i32
    %c0_i32_4 = arith.constant 0 : i32
    %13 = arith.cmpi ne, %12, %c0_i32_4 : i32
    scf.if %13 {
      %c0 = arith.constant 0 : index
      %c0_5 = arith.constant 0 : index
      %14 = vector.load %arg9[%c0, %c0_5] : memref<128x128xf32, #tpu.memory_space<vmem>>, vector<128x128xf32>
      %15 = vector.shape_cast %14 : vector<128x128xf32> to vector<1x128x128xf32>
      %cst = arith.constant dense<0.000000e+00> : vector<1xf32>
      %16 = vector.multi_reduction <add>, %15, %cst [1, 2] : vector<1x128x128xf32> to vector<1xf32>
      %17 = vector.shape_cast %16 : vector<1xf32> to vector<1x1x1xf32>
      %18 = vector.extract %17[0, 0, 0] : f32 from vector<1x1x1xf32>
      %19 = vector.broadcast %18 : f32 to vector<1x1xf32>
      %c0_6 = arith.constant 0 : index
      %c0_7 = arith.constant 0 : index
      %c0_8 = arith.constant 0 : index
      %c0_9 = arith.constant 0 : index
      %20 = vector.load %arg8[%c0_6, %c0_7, %c0_8, %c0_9] : memref<1x1x1x1xf32, #tpu.memory_space<vmem>>, vector<1x1x1x1xf32>
      %21 = vector.shape_cast %20 : vector<1x1x1x1xf32> to vector<1x1xf32>
      %22 = vector.shape_cast %19 : vector<1x1xf32> to vector<1x1x1x1xf32>
      tpu.vector_store %arg8[%c0_6, %c0_7, %c0_8, %c0_9], %22 {strides = array<i32>} : memref<1x1x1x1xf32, #tpu.memory_space<vmem>>, vector<1x1x1x1xf32>,
    } else {
    }
    return
  }
  func.func @transform_0(%arg0: i32, %arg1: i32, %arg2: i32, %arg3: memref<2xi32, #tpu.memory_space<smem>>, %arg4: memref<2xi32, #tpu.memory_space<smem>>, %arg5: memref<2x2xi32, #tpu.memory_space<smem>>) -> (i32, i32, i32) {
    %c1_i32 = arith.constant 1 : i32
    %0 = arith.muli %arg1, %c1_i32 : i32
    %1 = arith.addi %0, %arg2 : i32
    %2 = arith.index_cast %1 : i32 to index
    %3 = memref.load %arg3[%2] : memref<2xi32, #tpu.memory_space<smem>>
    %c0_i32 = arith.constant 0 : i32
    %c0_i32_0 = arith.constant 0 : i32
    return %arg0, %3, %c0_i32 : i32, i32, i32
  }
  func.func @transform_1(%arg0: i32, %arg1: i32, %arg2: i32, %arg3: memref<2xi32, #tpu.memory_space<smem>>, %arg4: memref<2xi32, #tpu.memory_space<smem>>, %arg5: memref<2x2xi32, #tpu.memory_space<smem>>) -> (i32, i32, i32) {
    %c1_i32 = arith.constant 1 : i32
    %0 = arith.muli %arg1, %c1_i32 : i32
    %1 = arith.addi %0, %arg2 : i32
    %2 = arith.index_cast %1 : i32 to index
    %3 = memref.load %arg4[%2] : memref<2xi32, #tpu.memory_space<smem>>
    %c0_i32 = arith.constant 0 : i32
    %c0_i32_0 = arith.constant 0 : i32
    return %arg0, %c0_i32, %3 : i32, i32, i32
  }
  func.func @transform_2(%arg0: i32, %arg1: i32, %arg2: i32, %arg3: memref<2xi32, #tpu.memory_space<smem>>, %arg4: memref<2xi32, #tpu.memory_space<smem>>, %arg5: memref<2x2xi32, #tpu.memory_space<smem>>) -> (i32, i32, i32, i32) {
    %c0_i32 = arith.constant 0 : i32
    %c0_i32_0 = arith.constant 0 : i32
    %c0_i32_1 = arith.constant 0 : i32
    return %arg0, %arg1, %c0_i32, %c0_i32_0 : i32, i32, i32, i32
  }
}

</mosaic_0001>

<bundles_post_ra>
// kernel: tpu_custom_call.1
= control target key start
LH: loop header
LB: loop body
LE: loop exit
PB: predicated region body
PF: predicated region fallthrough
CT: control target
= control target key end

     0   :  { %s1482_s0 = inlined_call_operand.vmem [shape: s32[2], index: 0, kind: input, shape index: {}]   ;;  %s1483_s3 = inlined_call_operand.vmem [shape: f32[2,128,8], index: 3, kind: input, shape index: {}]   ;;  %s1484_s4 = inlined_call_operand.vmem [shape: f32[2,8,128], index: 4, kind: input, shape index: {}]   ;;  %s1485_s5 = inlined_call_operand.vmem [shape: f32[2,2,1,1], index: 5, kind: output, shape index: {}]   ;;  %s1486_s1 = inlined_call_operand.vmem [shape: s32[2], index: 1, kind: input, shape index: {}]   ;;  %s1487_s2 = inlined_call_operand.vmem [shape: s32[2,2], index: 2, kind: input, shape index: {}]  }
   0x1   :  { %s10_s20 = sshll.u32 %s1482_s0, 4  ;;  %s14_s23 = sshll.u32 %s1486_s1, 4  ;;  %s11_s20 = int_to_ptr.vmem [resolvable:$true] %s10_s20  ;;  %s15_s23 = int_to_ptr.vmem [resolvable:$true] %s14_s23 }
   0x2   :  { %s1064_s24 = scalar_lea.vmem %s11_s20, 16  ;;  %p1069_p1 = scmp.lt.s32.totalorder %s11_s20, %s11_s20 }
   0x3   :  { %p1065_p0 = scmp.ne.s32.totalorder %s11_s20, %s1064_s24  ;;  %p1070_p2 = scmp.lt.s32.totalorder %s1064_s24, %s1064_s24 }
   0x5   :  { %p1071_p3 = por %p1070_p2, %p1069_p1 }
   0x7   :  { %p1072_p4 = pnand %p1071_p3, %p1065_p0 }
   0x9   :  { %1075 = shalt.err (!%p1072_p4)  }
   0xa   :  { %s1142_s25 = smov [#allocation4]   ;;  %s1076_s26 = scalar_lea.vmem %s15_s23, 16 }
   0xb   :  { %13 = dma.vmem_to_smem %s11_s20, 16, %s1142_s25, [#allocation3] }
   0xc   :  { %p1077_p5 = scmp.ne.s32.totalorder %s15_s23, %s1076_s26  ;;  %p1081_p6 = scmp.lt.s32.totalorder %s15_s23, %s15_s23 }
   0xd   :  { %p1082_p7 = scmp.lt.s32.totalorder %s1076_s26, %s1076_s26 }
   0xf   :  { %p1083_p8 = por %p1082_p7, %p1081_p6 }
  0x11   :  { %p1084_p9 = pnand %p1083_p8, %p1077_p5 }
  0x13   :  { %1087 = shalt.err (!%p1084_p9)  }
  0x14   :  { %s1143_s0 = smov [#allocation5]   ;;  %s18_s28 = sshll.u32 %s1487_s2, 4  ;;  %s19_s28 = int_to_ptr.vmem [resolvable:$true] %s18_s28 }
  0x15   :  { %17 = dma.vmem_to_smem %s15_s23, 16, %s1143_s0, [#allocation3] }
  0x16   :  { %s1088_s29 = scalar_lea.vmem %s19_s28, 32  ;;  %p1093_p11 = scmp.lt.s32.totalorder %s19_s28, %s19_s28 }
  0x17   :  { %p1089_p10 = scmp.ne.s32.totalorder %s19_s28, %s1088_s29  ;;  %p1094_p12 = scmp.lt.s32.totalorder %s1088_s29, %s1088_s29 }
  0x19   :  { %p1095_p13 = por %p1094_p12, %p1093_p11 }
  0x1b   :  { %p1096_p0 = pnand %p1095_p13, %p1089_p10 }
  0x1d   :  { %1099 = shalt.err (!%p1096_p0)  }
  0x1e   :  { %s1144_s30 = smov [#allocation6]  }
  0x1f   :  { %21 = dma.vmem_to_smem %s19_s28, 32, %s1144_s30, [#allocation3] }
  0x20   :  { %1120 = dma.done.wait [#allocation3], 64 }
  0x21   :  { %1121 = vsyncadd [#allocation3], 4294967232 }
  0x22   :  { %23 = sfence }
  0x23   :  { %s1188_s6 = smov 0   ;;  %s1190_s7 = smov 0  }
  0x24   :  { %s1192_s8 = smov 0   ;;  %s1194_s2 = smov 0  }
  0x25   :  { %s1196_s9 = smov 0  }
  0x26 LB: > { %s44_s10 = sadd.s32 1, %s1132_s8  ;;  %s48_s11 = sadd.s32 1, %s1136_s2  ;;  %s1140_s9 = sphi %s1196_s9, %s29_s9   ;;  %s1136_s2 = sphi %s1194_s2, %s1491_s2   ;;  %s1132_s8 = sphi %s1192_s8, %s1490_s8   ;;  %s1128_s7 = sphi %s1190_s7, %s1489_s7   ;;  %s1124_s6 = sphi %s1188_s6, %s1488_s6  }
  0x27   : > { %p46_p1 = scmp.ge.s32.totalorder %s44_s10, 2  ;;  %p967_p2 = scmp.ge.s32.totalorder %s1140_s9, 1 }
  0x28   : > { %p187_p3 = scmp.lt.s32.totalorder %s1140_s9, 5 }
  0x29   : > { %s1493_s10 = smov (%p46_p1, %s44_s10), 0  ;;  %s1495_s11 = smov (!%p46_p1, %s48_s11), %s1136_s2 }
  0x2a   : > { %p188_p4 = pnand %p967_p2, %p187_p3  ;;  %p50_p5 = scmp.ge.s32.totalorder %s1495_s11, 2 }
  0x2b   : > { %s1223_s12 = sld [smem:[#allocation4 + %s1124_s6]] (!%p188_p4)  ;;  %p229_p6 = scmp.lt.s32.totalorder (!%p188_p4), %s1128_s7, 1  ;;  %v1145_v0 = vmov (!%p188_p4), 0.0  }
  0x2c   : > { %s1497_s11 = smov (%p50_p5, %s1495_s11), 0  ;;  %191 = sbr.rel (%p188_p4) target bundleno = 564 (0x234), region = 28 }
  0x2d   : > { %s1227_s13 = sld [smem:[#allocation5 + %s1124_s6]] (!%p188_p4)  ;;  %p253_p7 = scmp.lt.s32.totalorder (!%p188_p4), %s1124_s6, 1  ;;  %263 = vst [vmem:[#allocation2] sm:$0xff] (!%p188_p4), %v1145_v0  ;;  %264 = vst [vmem:[#allocation2 + $0x8] sm:$0xff] (!%p188_p4), %v1145_v0 }
  0x2e   : > { %265 = vst [vmem:[#allocation2 + $0x10] sm:$0xff] (!%p188_p4), %v1145_v0  ;;  %266 = vst [vmem:[#allocation2 + $0x18] sm:$0xff] (!%p188_p4), %v1145_v0  ;;  %s279_s19 = sshra.s32 (!%p188_p4), %s1124_s6, 7  ;;  %s284_s25 = sand.u32 (!%p188_p4), 127, %s1124_s6 }
  0x2f   : > { %267 = vst [vmem:[#allocation2 + $0x20] sm:$0xff] (!%p188_p4), %v1145_v0  ;;  %268 = vst [vmem:[#allocation2 + $0x28] sm:$0xff] (!%p188_p4), %v1145_v0  ;;  %s281_s24 = sadd.s32 (!%p188_p4), %s1128_s7, %s279_s19 }
  0x30   : > { %269 = vst [vmem:[#allocation2 + $0x30] sm:$0xff] (!%p188_p4), %v1145_v0  ;;  %270 = vst [vmem:[#allocation2 + $0x38] sm:$0xff] (!%p188_p4), %v1145_v0  ;;  %s973_s0 = sshll.u32 (!%p188_p4), %s281_s24, 7 }
  0x31   : > { %271 = vst [vmem:[#allocation2 + $0x40] sm:$0xff] (!%p188_p4), %v1145_v0  ;;  %272 = vst [vmem:[#allocation2 + $0x48] sm:$0xff] (!%p188_p4), %v1145_v0  ;;  %s968_s20 = sshll.u32 (!%p188_p4), %s1223_s12, 4 }
  0x32   : > { %273 = vst [vmem:[#allocation2 + $0x50] sm:$0xff] (!%p188_p4), %v1145_v0  ;;  %274 = vst [vmem:[#allocation2 + $0x58] sm:$0xff] (!%p188_p4), %v1145_v0  ;;  %p231_p8 = scmp.lt.s32.totalorder (!%p188_p4), %s968_s20, 15 }
  0x33   : > { %275 = vst [vmem:[#allocation2 + $0x60] sm:$0xff] %v1145_v0  ;;  %276 = vst [vmem:[#allocation2 + $0x68] sm:$0xff] %v1145_v0  ;;  %s230_s14 = scalar_select %p229_p6, %s1128_s7, 1 }
  0x34   : > { %277 = vst [vmem:[#allocation2 + $0x70] sm:$0xff] %v1145_v0  ;;  %278 = vst [vmem:[#allocation2 + $0x78] sm:$0xff] %v1145_v0  ;;  %s254_s15 = scalar_select %p253_p7, %s1124_s6, 1 }
  0x35   : > { %s969_s16 = sshll.u32 %s230_s14, 4  ;;  %s972_s17 = sshll.u32 %s230_s14, 1 }
  0x36   : > { %s1236_s18 = sadd.s32 %s972_s17, %s254_s15  ;;  %p244_p9 = scmp.lt.s32.totalorder %s1227_s13, 0 }
  0x37   : > { %s257_s23 = scalar_lea.vmem %s1485_s5, %s1236_s18  ;;  %s1499_s20 = smov (!%p231_p8, %s968_s20), 15 }
  0x38   : > { %s1501_s13 = smov (!%p244_p9, %s1227_s13), 0  ;;  %s234_s26 = sadd.s32 %s969_s16, %s1499_s20 }
  0x39   : > { %s970_s1 = sshll.u32 %s234_s26, 3  ;;  %s246_s27 = sadd.s32 %s1501_s13, %s230_s14 }
  0x3a   : > { %s1251_s30 = scalar_lea.vmem %s1483_s3, %s970_s1  ;;  %s1253_s12 = sshll.u32 %s246_s27, 3 }
  0x3b   : > { %s248_s21 = scalar_lea.vmem %s1484_s4, %s1253_s12  ;;  %s285_s7 = sadd.s32 %s973_s0, %s284_s25 }
  0x3c   : > { %s1259_s6 = sld [smem:[#allocation6 + %s285_s7]] }
  0x42   : > { %p974_p10 = scmp.le.s32.totalorder %s1259_s6, 0 }
  0x43   : > { %v293_v1 = vld [vmem:[%s1251_s30 + $0x10] sm:$0xff] (!%p974_p10)  ;;  %v291_v2 = vld [vmem:[%s1251_s30] sm:$0xff] (!%p974_p10)  ;;  %v1146_v3 = vmov (!%p974_p10), 0   ;;  %v294_v4 = vld [vmem:[%s1251_s30 + $0x18] sm:$0xff] (!%p974_p10)  ;;  %v1147_v18 = vmov (!%p974_p10), 1   ;;  %v1148_v19 = vmov (!%p974_p10), 2   ;;  %v388_v38 = vlaneseq (!%p974_p10)  ;;  %s752_s16 = scvt.s32.f32 (!%p974_p10), %s1259_s6 }
  0x44   : > { %290 = sbr.rel (%p974_p10) target bundleno = 327 (0x147), region = 36  ;;  %1027 = vset.pattern.permute.xlu1 (!%p974_p10), %v1146_v3  ;;  %1026 = vset.pattern.permute.xlu0 (!%p974_p10), %v1146_v3  ;;  %v292_v5 = vld [vmem:[%s1251_s30 + $0x8] sm:$0xff] (!%p974_p10)  ;;  %v295_v7 = vld [vmem:[%s1251_s30 + $0x20] sm:$0xff] (!%p974_p10)  ;;  %v298_v8 = vld [vmem:[%s1251_s30 + $0x38] sm:$0xff] (!%p974_p10) }
  0x45   : > { %320 = vperm.xlu1 (!%p974_p10), %1027, %v293_v1   ;;  %310 = vperm.xlu0 (!%p974_p10), %1026, %v291_v2   ;;  %v296_v6 = vld [vmem:[%s1251_s30 + $0x28] sm:$0xff] (!%p974_p10)  ;;  %v297_v9 = vld [vmem:[%s1251_s30 + $0x30] sm:$0xff] (!%p974_p10)  ;;  %v299_v11 = vld [vmem:[%s1251_s30 + $0x40] sm:$0xff] (!%p974_p10)  ;;  %v389_v41 = vshrl.u32 (!%p974_p10), %v388_v38, 7  ;;  %s753_s19 = smul.f32 (!%p974_p10), 0.5, %s752_s16 }
  0x46   : > { %v300_v10 = vld [vmem:[%s1251_s30 + $0x48] sm:$0xff] (!%p974_p10)  ;;  %v302_v12 = vld [vmem:[%s1251_s30 + $0x58] sm:$0xff] (!%p974_p10)  ;;  %v301_v13 = vld [vmem:[%s1251_s30 + $0x50] sm:$0xff] (!%p974_p10) }
  0x47   : > { %v304_v14 = vld [vmem:[%s1251_s30 + $0x68] sm:$0xff] (!%p974_p10)  ;;  %v303_v15 = vld [vmem:[%s1251_s30 + $0x60] sm:$0xff] (!%p974_p10)  ;;  %v306_v16 = vld [vmem:[%s1251_s30 + $0x78] sm:$0xff] (!%p974_p10)  ;;  %v390_v44 = vsub.s32 (!%p974_p10), 0, %v389_v41  ;;  %v506_v51 = vsub.s32 (!%p974_p10), 1, %v389_v41  ;;  %v622_v56 = vsub.s32 (!%p974_p10), 2, %v389_v41 }
  0x48   : > { %v305_v17 = vld [vmem:[%s1251_s30 + $0x70] sm:$0xff] (!%p974_p10)  ;;  %v307_v47 = vld [vmem:[%s248_s21] sm:$0xff] (!%p974_p10) }
  0x49   : > { %325 = vperm.xlu1 (!%p974_p10), %1027, %v294_v4   ;;  %315 = vperm.xlu0 (!%p974_p10), %1026, %v292_v5   ;;  %v391_v48 = vrot.slane (!%p974_p10), %v307_v47, %v390_v44  ;;  %v1292_v60 = vrot.slane (!%p974_p10), %v307_v47, %v506_v51 }
  0x4d   : > { %335 = vperm.xlu1 %1027, %v296_v6   ;;  %330 = vperm.xlu0 %1026, %v295_v7  }
  0x51   : > { %345 = vperm.xlu1 %1027, %v298_v8   ;;  %340 = vperm.xlu0 %1026, %v297_v9  }
  0x55   : > { %355 = vperm.xlu1 %1027, %v300_v10   ;;  %350 = vperm.xlu0 %1026, %v299_v11  }
  0x59   : > { %365 = vperm.xlu1 %1027, %v302_v12   ;;  %360 = vperm.xlu0 %1026, %v301_v13  }
  0x5d   : > { %375 = vperm.xlu1 %1027, %v304_v14   ;;  %370 = vperm.xlu0 %1026, %v303_v15  }
  0x61   : > { %385 = vperm.xlu1 %1027, %v306_v16   ;;  %380 = vperm.xlu0 %1026, %v305_v17  }
  0x65   : > { %1029 = vset.pattern.permute.xlu1 %v1147_v18  ;;  %1028 = vset.pattern.permute.xlu0 %v1147_v18 }
  0x66   : > { %445 = vperm.xlu1 %1029, %v292_v5   ;;  %441 = vperm.xlu0 %1028, %v291_v2  }
  0x6a   : > { %449 = vperm.xlu1 %1029, %v293_v1   ;;  %453 = vperm.xlu0 %1028, %v294_v4  }
  0x6e   : > { %457 = vperm.xlu1 %1029, %v295_v7   ;;  %461 = vperm.xlu0 %1028, %v296_v6  }
  0x72   : > { %465 = vperm.xlu1 %1029, %v297_v9   ;;  %469 = vperm.xlu0 %1028, %v298_v8  }
  0x76   : > { %473 = vperm.xlu1 %1029, %v299_v11   ;;  %477 = vperm.xlu0 %1028, %v300_v10  }
  0x7a   : > { %481 = vperm.xlu1 %1029, %v301_v13   ;;  %485 = vperm.xlu0 %1028, %v302_v12  }
  0x7e   : > { %489 = vperm.xlu1 %1029, %v303_v15   ;;  %493 = vperm.xlu0 %1028, %v304_v14  }
  0x82   : > { %497 = vperm.xlu1 %1029, %v305_v17   ;;  %501 = vperm.xlu0 %1028, %v306_v16  }
  0x86   : > { %1030 = vset.pattern.permute.xlu1 %v1148_v19  ;;  %1031 = vset.pattern.permute.xlu0 %v1148_v19 }
  0x87   : > { %557 = vperm.xlu1 %1030, %v291_v2   ;;  %561 = vperm.xlu0 %1031, %v292_v5   ;;  %v1300_v2 = vstv %s753_s19 }
  0x8b   : > { %565 = vperm.xlu1 %1030, %v293_v1   ;;  %573 = vperm.xlu0 %1031, %v295_v7   ;;  %v1298_v1 = vrot.slane %v307_v47, %v622_v56 }
  0x8f   : > { %569 = vperm.xlu1 %1030, %v294_v4   ;;  %581 = vperm.xlu0 %1031, %v297_v9  }
  0x93   : > { %577 = vperm.xlu1 %1030, %v296_v6   ;;  %589 = vperm.xlu0 %1031, %v299_v11  }
  0x97   : > { %585 = vperm.xlu1 %1030, %v298_v8   ;;  %597 = vperm.xlu0 %1031, %v301_v13  }
  0x9b   : > { %593 = vperm.xlu1 %1030, %v300_v10   ;;  %605 = vperm.xlu0 %1031, %v303_v15  }
  0x9f   : > { %601 = vperm.xlu1 %1030, %v302_v12   ;;  %613 = vperm.xlu0 %1031, %v305_v17  }
  0xa3   : > { %609 = vperm.xlu1 %1030, %v304_v14  }
  0xa7   : > { %617 = vperm.xlu1 %1030, %v306_v16  }
  0xc4   : > { %v321_v20 = vpop.permute.xlu1 %320  ;;  %v311_v21 = vpop.permute.xlu0 %310 }
  0xc5   : > { %v394_v52 = vsub.f32 %v321_v20, %v391_v48  ;;  %v392_v53 = vsub.f32 %v311_v21, %v391_v48 }
  0xc7   : > { %v410_v61 = vmul.f32 %v394_v52, %v394_v52  ;;  %v408_v62 = vmul.f32 %v392_v53, %v392_v53 }
  0xc8   : > { %v326_v22 = vpop.permute.xlu1 %325  ;;  %v316_v23 = vpop.permute.xlu0 %315 }
  0xc9   : > { %v395_v57 = vsub.f32 %v326_v22, %v391_v48  ;;  %v393_v58 = vsub.f32 %v316_v23, %v391_v48 }
  0xcb   : > { %v411_v3 = vmul.f32 %v395_v57, %v395_v57  ;;  %v409_v7 = vmul.f32 %v393_v58, %v393_v58 }
  0xcc   : > { %v336_v24 = vpop.permute.xlu1 %335  ;;  %v331_v25 = vpop.permute.xlu0 %330 }
  0xcd   : > { %v397_v59 = vsub.f32 %v336_v24, %v391_v48  ;;  %v396_v4 = vsub.f32 %v331_v25, %v391_v48 }
  0xcf   : > { %v413_v11 = vmul.f32 %v397_v59, %v397_v59  ;;  %v412_v21 = vmul.f32 %v396_v4, %v396_v4 }
  0xd0   : > { %v346_v26 = vpop.permute.xlu1 %345  ;;  %v341_v27 = vpop.permute.xlu0 %340 }
  0xd1   : > { %v399_v5 = vsub.f32 %v346_v26, %v391_v48  ;;  %v398_v6 = vsub.f32 %v341_v27, %v391_v48 }
  0xd3   : > { %v415_v22 = vmul.f32 %v399_v5, %v399_v5  ;;  %v414_v23 = vmul.f32 %v398_v6, %v398_v6 }
  0xd4   : > { %v356_v28 = vpop.permute.xlu1 %355  ;;  %v351_v29 = vpop.permute.xlu0 %350 }
  0xd5   : > { %v401_v8 = vsub.f32 %v356_v28, %v391_v48  ;;  %v400_v9 = vsub.f32 %v351_v29, %v391_v48 }
  0xd7   : > { %v1309_v25 = vmul.f32 %v401_v8, %v401_v8  ;;  %v416_v26 = vmul.f32 %v400_v9, %v400_v9 }
  0xd8   : > { %v366_v30 = vpop.permute.xlu1 %365  ;;  %v361_v31 = vpop.permute.xlu0 %360 }
  0xd9   : > { %v403_v10 = vsub.f32 %v366_v30, %v391_v48  ;;  %v402_v15 = vsub.f32 %v361_v31, %v391_v48 }
  0xdb   : > { %v1311_v27 = vmul.f32 %v403_v10, %v403_v10 }
  0xdc   : > { %v376_v32 = vpop.permute.xlu1 %375  ;;  %v371_v33 = vpop.permute.xlu0 %370 }
  0xdd   : > { %v405_v16 = vsub.f32 %v376_v32, %v391_v48  ;;  %v404_v24 = vsub.f32 %v371_v33, %v391_v48 }
  0xe0   : > { %v1278_v34 = vpop.permute.xlu1 %385  ;;  %v381_v35 = vpop.permute.xlu0 %380 }
  0xe1   : > { %v406_v28 = vsub.f32 %v381_v35, %v391_v48  ;;  %v1324_v47 = vsub.f32 %v1278_v34, %v391_v48 }
  0xe5   : > { %v446_v36 = vpop.permute.xlu1 %445  ;;  %v442_v37 = vpop.permute.xlu0 %441 }
  0xe6   : > { %v509_v12 = vsub.f32 %v446_v36, %v1292_v60  ;;  %v508_v13 = vsub.f32 %v442_v37, %v1292_v60  ;;  %v1314_v36 = vmul.f32 %v402_v15, %v402_v15  ;;  %v1316_v37 = vmul.f32 %v405_v16, %v405_v16 }
  0xe8   : > { %v525_v29 = vmul.f32 %v509_v12, %v509_v12  ;;  %v524_v30 = vmul.f32 %v508_v13, %v508_v13 }
  0xe9   : > { %v450_v39 = vpop.permute.xlu1 %449  ;;  %v454_v40 = vpop.permute.xlu0 %453 }
  0xea   : > { %v510_v14 = vsub.f32 %v450_v39, %v1292_v60  ;;  %v511_v17 = vsub.f32 %v454_v40, %v1292_v60  ;;  %v1318_v40 = vmul.f32 %v404_v24, %v404_v24  ;;  %v541_v53 = vadd.f32 %v525_v29, %v409_v7 }
  0xeb   : > { %v540_v56 = vadd.f32 %v524_v30, %v408_v62 }
  0xec   : > { %v526_v31 = vmul.f32 %v510_v14, %v510_v14  ;;  %v527_v38 = vmul.f32 %v511_v17, %v511_v17 }
  0xed   : > { %v458_v42 = vpop.permute.xlu1 %457  ;;  %v462_v43 = vpop.permute.xlu0 %461 }
  0xee   : > { %v512_v18 = vsub.f32 %v458_v42, %v1292_v60  ;;  %v513_v32 = vsub.f32 %v462_v43, %v1292_v60  ;;  %v1326_v43 = vmul.f32 %v406_v28, %v406_v28  ;;  %v542_v57 = vadd.f32 %v526_v31, %v410_v61 }
  0xf0   : > { %v528_v39 = vmul.f32 %v512_v18, %v512_v18  ;;  %v529_v58 = vmul.f32 %v513_v32, %v513_v32 }
  0xf1   : > { %v466_v45 = vpop.permute.xlu1 %465  ;;  %v470_v46 = vpop.permute.xlu0 %469 }
  0xf2   : > { %v514_v33 = vsub.f32 %v466_v45, %v1292_v60  ;;  %v515_v41 = vsub.f32 %v470_v46, %v1292_v60  ;;  %v543_v45 = vadd.f32 %v527_v38, %v411_v3  ;;  %v544_v59 = vadd.f32 %v528_v39, %v412_v21 }
  0xf3   : > { %v545_v61 = vadd.f32 %v529_v58, %v413_v11 }
  0xf4   : > { %v531_v5 = vmul.f32 %v515_v41, %v515_v41 }
  0xf5   : > { %v474_v49 = vpop.permute.xlu1 %473  ;;  %v1285_v50 = vpop.permute.xlu0 %477 }
  0xf6   : > { %v516_v42 = vsub.f32 %v474_v49, %v1292_v60  ;;  %v530_v49 = vmul.f32 %v514_v33, %v514_v33  ;;  %v517_v34 = vsub.f32 %v1285_v50, %v1292_v60  ;;  %v1344_v18 = vadd.f32 %v531_v5, %v415_v22 }
  0xf8   : > { %v532_v6 = vmul.f32 %v516_v42, %v516_v42  ;;  %v546_v17 = vadd.f32 %v530_v49, %v414_v23  ;;  %v533_v21 = vmul.f32 %v517_v34, %v517_v34 }
  0xf9   : > { %v1288_v54 = vpop.permute.xlu1 %481  ;;  %v1290_v55 = vpop.permute.xlu0 %485 }
  0xfa   : > { %v518_v3 = vsub.f32 %v1288_v54, %v1292_v60  ;;  %v519_v7 = vsub.f32 %v1290_v55, %v1292_v60  ;;  %v548_v28 = vadd.f32 %v532_v6, %v416_v26 }
  0xfc   : > { %v534_v23 = vmul.f32 %v518_v3, %v518_v3  ;;  %v535_v31 = vmul.f32 %v519_v7, %v519_v7  ;;  %v754_v7 = vld [vmem:[#allocation2] sm:$0xff] }
  0xfd   : > { %v1294_v63 = vpop.permute.xlu1 %489  ;;  %v1296_v0 = vpop.permute.xlu0 %493 }
  0xfe   : > { %v520_v13 = vsub.f32 %v1294_v63, %v1292_v60  ;;  %v521_v11 = vsub.f32 %v1296_v0, %v1292_v60 }
 0x100   : > { %v536_v32 = vmul.f32 %v520_v13, %v520_v13  ;;  %v537_v0 = vmul.f32 %v521_v11, %v521_v11 }
 0x101   : > { %v498_v19 = vpop.permute.xlu1 %497  ;;  %v1307_v20 = vpop.permute.xlu0 %501 }
 0x102   : > { %v522_v55 = vsub.f32 %v498_v19, %v1292_v60  ;;  %v523_v42 = vsub.f32 %v1307_v20, %v1292_v60  ;;  %v1368_v60 = vadd.f32 %v535_v31, %v1311_v27  ;;  %v1371_v20 = vadd.f32 %v536_v32, %v1318_v40 }
 0x103   : > { %v1380_v34 = vadd.f32 %v537_v0, %v1316_v37 }
 0x104   : > { %v1385_v40 = vmul.f32 %v523_v42, %v523_v42 }
 0x106   : > { %v558_v35 = vpop.permute.xlu1 %557  ;;  %v562_v44 = vpop.permute.xlu0 %561 }
 0x107   : > { %v624_v51 = vsub.f32 %v558_v35, %v1298_v1  ;;  %v625_v52 = vsub.f32 %v562_v44, %v1298_v1 }
 0x109   : > { %v640_v46 = vmul.f32 %v624_v51, %v624_v51  ;;  %v641_v4 = vmul.f32 %v625_v52, %v625_v52  ;;  %v538_v51 = vmul.f32 %v522_v55, %v522_v55 }
 0x10a   : > { %v566_v48 = vpop.permute.xlu1 %565  ;;  %v574_v8 = vpop.permute.xlu0 %573 }
 0x10b   : > { %v656_v9 = vadd.f32 %v640_v46, %v540_v56  ;;  %v657_v10 = vadd.f32 %v641_v4, %v541_v53  ;;  %v626_v12 = vsub.f32 %v566_v48, %v1298_v1  ;;  %v628_v62 = vsub.f32 %v574_v8, %v1298_v1 }
 0x10c   : > { %v1364_v56 = vadd.f32 %v533_v21, %v1309_v25  ;;  %v1383_v27 = vadd.f32 %v538_v51, %v1326_v43  ;;  %v755_v21 = vld [vmem:[#allocation2 + $0x8] sm:$0xff] }
 0x10d   : > { %v1340_v14 = vadd.f32 1e-08, %v656_v9  ;;  %v1342_v50 = vadd.f32 1e-08, %v657_v10  ;;  %v642_v15 = vmul.f32 %v626_v12, %v626_v12  ;;  %v644_v16 = vmul.f32 %v628_v62, %v628_v62 }
 0x10e   : > { %v570_v54 = vpop.permute.xlu1 %569  ;;  %v582_v24 = vpop.permute.xlu0 %581 }
 0x10f   : > { %1032 = vlog2.f32 %v1340_v14  ;;  %v658_v63 = vadd.f32 %v642_v15, %v542_v57  ;;  %v660_v29 = vadd.f32 %v644_v16, %v544_v59  ;;  %v627_v30 = vsub.f32 %v570_v54, %v1298_v1 }
 0x110   : > { %1034 = vlog2.f32 %v1342_v50  ;;  %v630_v22 = vsub.f32 %v582_v24, %v1298_v1  ;;  %v550_v57 = vadd.f32 %v534_v23, %v1314_v36  ;;  %vm688_vm0 = vcmp.le.f32.partialorder %v1340_v14, 0.0225 }
 0x111   : > { %v1353_v38 = vadd.f32 1e-08, %v658_v63  ;;  %v1355_v39 = vadd.f32 1e-08, %v660_v29  ;;  %v643_v26 = vmul.f32 %v627_v30, %v627_v30  ;;  %vm689_vm1 = vcmp.le.f32.partialorder %v1342_v50, 0.0225 }
 0x112   : > { %v646_v19 = vmul.f32 %v630_v22, %v630_v22  ;;  %v578_v33 = vpop.permute.xlu1 %577  ;;  %v590_v41 = vpop.permute.xlu0 %589  ;;  %v756_v50 = vld [vmem:[#allocation2 + $0x10] sm:$0xff] }
 0x113   : > { %1036 = vlog2.f32 %v1353_v38  ;;  %v629_v35 = vsub.f32 %v578_v33, %v1298_v1  ;;  %v632_v44 = vsub.f32 %v590_v41, %v1298_v1  ;;  %v659_v52 = vadd.f32 %v643_v26, %v543_v45  ;;  %v758_v41 = vld [vmem:[#allocation2 + $0x20] sm:$0xff] }
 0x114   : > { %1038 = vlog2.f32 %v1355_v39  ;;  %v662_v53 = vadd.f32 %v646_v19, %v546_v17  ;;  %vm690_vm2 = vcmp.le.f32.partialorder %v1353_v38, 0.0225  ;;  %vm692_vm3 = vcmp.le.f32.partialorder %v1355_v39, 0.0225 }
 0x115   : > { %v645_v58 = vmul.f32 %v629_v35, %v629_v35  ;;  %v648_v59 = vmul.f32 %v632_v44, %v632_v44  ;;  %v1373_v46 = vadd.f32 1e-08, %v659_v52 }
 0x116   : > { %v1375_v4 = vadd.f32 1e-08, %v662_v53  ;;  %v586_v49 = vpop.permute.xlu1 %585  ;;  %v598_v45 = vpop.permute.xlu0 %597 }
 0x117   : > { %v661_v5 = vadd.f32 %v645_v58, %v545_v61  ;;  %v664_v6 = vadd.f32 %v648_v59, %v548_v28  ;;  %v631_v25 = vsub.f32 %v586_v49, %v1298_v1  ;;  %v634_v36 = vsub.f32 %v598_v45, %v1298_v1 }
 0x118   : > { %1040 = vlog2.f32 %v1373_v46  ;;  %vm691_vm4 = vcmp.le.f32.partialorder %v1373_v46, 0.0225  ;;  %vm694_vm5 = vcmp.le.f32.partialorder %v1375_v4, 0.0225 }
 0x119   : > { %v1033_v48 = vpop.eup %1032  ;;  %1042 = vlog2.f32 %v1375_v4  ;;  %v1389_v8 = vadd.f32 1e-08, %v661_v5  ;;  %v1391_v9 = vadd.f32 1e-08, %v664_v6  ;;  %v647_v10 = vmul.f32 %v631_v25, %v631_v25 }
 0x11a   : > { %v1035_v12 = vpop.eup %1034  ;;  %v705_v37 = vmul.f32 0.6931472, %v1033_v48  ;;  %v650_v43 = vmul.f32 %v634_v36, %v634_v36  ;;  %v594_v62 = vpop.permute.xlu1 %593 }
 0x11b   : > { %v606_v61 = vpop.permute.xlu0 %605  ;;  %v707_v3 = vmul.f32 0.6931472, %v1035_v12  ;;  %1044 = vlog2.f32 %v1389_v8  ;;  %v663_v15 = vadd.f32 %v647_v10, %v1344_v18  ;;  %v633_v54 = vsub.f32 %v594_v62, %v1298_v1 }
 0x11c   : > { %v736_v13 = vsel %vm688_vm0, %v705_v37, 0.0  ;;  %1046 = vlog2.f32 %v1391_v9  ;;  %v666_v14 = vadd.f32 %v650_v43, %v550_v57  ;;  %v636_v24 = vsub.f32 %v606_v61, %v1298_v1  ;;  %v760_v43 = vld [vmem:[#allocation2 + $0x30] sm:$0xff] }
 0x11d   : > { %v1037_v16 = vpop.eup %1036  ;;  %v771_v17 = vmul.f32 %v1300_v2, %v736_v13  ;;  %v737_v11 = vsel %vm689_vm1, %v707_v3, 0.0  ;;  %v1406_v29 = vadd.f32 1e-08, %v663_v15  ;;  %v649_v31 = vmul.f32 %v633_v54, %v633_v54 }
 0x11e   : > { %v1039_v28 = vpop.eup %1038  ;;  %v772_v55 = vmul.f32 %v1300_v2, %v737_v11  ;;  %v709_v63 = vmul.f32 0.6931472, %v1037_v16  ;;  %v1408_v30 = vadd.f32 1e-08, %v666_v14  ;;  %v602_v18 = vpop.permute.xlu1 %601  ;;  %v652_v32 = vmul.f32 %v636_v24, %v636_v24  ;;  %v759_v14 = vld [vmem:[#allocation2 + $0x28] sm:$0xff]  ;;  %v762_v11 = vld [vmem:[#allocation2 + $0x40] sm:$0xff] }
 0x11f   : > { %v787_v22 = vadd.f32 %v771_v17, %v754_v7  ;;  %v713_v23 = vmul.f32 0.6931472, %v1039_v28  ;;  %1048 = vlog2.f32 %v1406_v29  ;;  %v614_v19 = vpop.permute.xlu0 %613  ;;  %v665_v44 = vadd.f32 %v649_v31, %v1364_v56  ;;  %v757_v56 = vld [vmem:[#allocation2 + $0x18] sm:$0xff] }
 0x120   : > { %v788_v0 = vadd.f32 %v772_v55, %v755_v21  ;;  %v738_v26 = vsel %vm690_vm2, %v709_v63, 0.0  ;;  %1050 = vlog2.f32 %v1408_v30  ;;  %v668_v51 = vadd.f32 %v652_v32, %v1371_v20 }
 0x121   : > { %803 = vst [vmem:[#allocation2] sm:$0xff] %v787_v22  ;;  %v773_v33 = vmul.f32 %v1300_v2, %v738_v26  ;;  %v740_v42 = vsel %vm692_vm3, %v713_v23, 0.0  ;;  %v635_v52 = vsub.f32 %v602_v18, %v1298_v1  ;;  %v638_v39 = vsub.f32 %v614_v19, %v1298_v1  ;;  %v764_v26 = vld [vmem:[#allocation2 + $0x50] sm:$0xff] }
 0x122   : > { %v1041_v35 = vpop.eup %1040  ;;  %804 = vst [vmem:[#allocation2 + $0x8] sm:$0xff] %v788_v0  ;;  %v775_v38 = vmul.f32 %v1300_v2, %v740_v42  ;;  %v610_v53 = vpop.permute.xlu1 %609  ;;  %v1425_v6 = vadd.f32 1e-08, %v665_v44  ;;  %v1427_v25 = vadd.f32 1e-08, %v668_v51  ;;  %v761_v0 = vld [vmem:[#allocation2 + $0x38] sm:$0xff] }
 0x123   : > { %v1043_v57 = vpop.eup %1042  ;;  %v789_v58 = vadd.f32 %v773_v33, %v756_v50  ;;  %v711_v59 = vmul.f32 0.6931472, %v1041_v35  ;;  %v637_v49 = vsub.f32 %v610_v53, %v1298_v1  ;;  %vm693_vm6 = vcmp.le.f32.partialorder %v1389_v8, 0.0225 }
 0x124   : > { %v791_v45 = vadd.f32 %v775_v38, %v758_v41  ;;  %v717_v5 = vmul.f32 0.6931472, %v1043_v57  ;;  %v651_v48 = vmul.f32 %v635_v52, %v635_v52  ;;  %v654_v10 = vmul.f32 %v638_v39, %v638_v39  ;;  %v763_v52 = vld [vmem:[#allocation2 + $0x48] sm:$0xff] }
 0x125   : > { %v1045_v36 = vpop.eup %1044  ;;  %805 = vst [vmem:[#allocation2 + $0x10] sm:$0xff] %v789_v58  ;;  %v739_v20 = vsel %vm691_vm4, %v711_v59, 0.0  ;;  %v653_v3 = vmul.f32 %v637_v49, %v637_v49  ;;  %vm696_vm7 = vcmp.le.f32.partialorder %v1391_v9, 0.0225  ;;  %1052 = vlog2.f32 %v1425_v6  ;;  %v766_v58 = vld [vmem:[#allocation2 + $0x60] sm:$0xff] }
 0x126   : > { %v1047_v12 = vpop.eup %1046  ;;  %807 = vst [vmem:[#allocation2 + $0x20] sm:$0xff] %v791_v45  ;;  %v774_v37 = vmul.f32 %v1300_v2, %v739_v20  ;;  %v742_v62 = vsel %vm694_vm5, %v717_v5, 0.0  ;;  %v715_v61 = vmul.f32 0.6931472, %v1045_v36  ;;  %v618_v13 = vpop.permute.xlu1 %617  ;;  %1054 = vlog2.f32 %v1427_v25 }
 0x127   : > { %v777_v7 = vmul.f32 %v1300_v2, %v742_v62  ;;  %v721_v46 = vmul.f32 0.6931472, %v1047_v12  ;;  %v667_v4 = vadd.f32 %v651_v48, %v1368_v60  ;;  %v670_v9 = vadd.f32 %v654_v10, %v1383_v27  ;;  %v765_v48 = vld [vmem:[#allocation2 + $0x58] sm:$0xff]  ;;  %v768_v12 = vld [vmem:[#allocation2 + $0x70] sm:$0xff] }
 0x128   : > { %v790_v15 = vadd.f32 %v774_v37, %v757_v56  ;;  %v741_v16 = vsel %vm693_vm6, %v715_v61, 0.0  ;;  %v669_v63 = vadd.f32 %v653_v3, %v1380_v34  ;;  %v639_v8 = vsub.f32 %v618_v13, %v1298_v1  ;;  %v767_v3 = vld [vmem:[#allocation2 + $0x68] sm:$0xff] }
 0x129   : > { %v793_v17 = vadd.f32 %v777_v7, %v760_v43  ;;  %v776_v21 = vmul.f32 %v1300_v2, %v741_v16  ;;  %v744_v54 = vsel %vm696_vm7, %v721_v46, 0.0  ;;  %v1049_v24 = vpop.eup %1048  ;;  %v683_v55 = vadd.f32 1e-08, %v667_v4  ;;  %v769_v4 = vld [vmem:[#allocation2 + $0x78] sm:$0xff] }
 0x12a   : > { %806 = vst [vmem:[#allocation2 + $0x18] sm:$0xff] %v790_v15  ;;  %v779_v28 = vmul.f32 %v1300_v2, %v744_v54  ;;  %v1051_v18 = vpop.eup %1050  ;;  %v423_v60 = vmul.f32 %v1324_v47, %v1324_v47  ;;  %v719_v23 = vmul.f32 0.6931472, %v1049_v24  ;;  %v686_v31 = vadd.f32 1e-08, %v670_v9 }
 0x12b   : > { %809 = vst [vmem:[#allocation2 + $0x30] sm:$0xff] %v793_v17  ;;  %v792_v22 = vadd.f32 %v776_v21, %v759_v14  ;;  %vm695_vm8 = vcmp.le.f32.partialorder %v1406_v29, 0.0225  ;;  %v725_v27 = vmul.f32 0.6931472, %v1051_v18  ;;  %1056 = vlog2.f32 %v683_v55 }
 0x12c   : > { %v795_v32 = vadd.f32 %v779_v28, %v762_v11  ;;  %v743_v50 = vsel %vm695_vm8, %v719_v23, 0.0  ;;  %vm698_vm9 = vcmp.le.f32.partialorder %v1408_v30, 0.0225  ;;  %1058 = vlog2.f32 %v686_v31 }
 0x12d   : > { %808 = vst [vmem:[#allocation2 + $0x28] sm:$0xff] %v792_v22  ;;  %v685_v1 = vadd.f32 1e-08, %v669_v63  ;;  %v555_v34 = vadd.f32 %v1385_v40, %v423_v60  ;;  %v778_v47 = vmul.f32 %v1300_v2, %v743_v50  ;;  %v746_v19 = vsel %vm698_vm9, %v725_v27, 0.0 }
 0x12e   : > { %811 = vst [vmem:[#allocation2 + $0x40] sm:$0xff] %v795_v32  ;;  %v655_v33 = vmul.f32 %v639_v8, %v639_v8  ;;  %v781_v41 = vmul.f32 %v1300_v2, %v746_v19  ;;  %vm697_vm10 = vcmp.le.f32.partialorder %v1425_v6, 0.0225  ;;  %vm700_vm11 = vcmp.le.f32.partialorder %v1427_v25, 0.0225 }
 0x12f   : > { %1060 = vlog2.f32 %v685_v1  ;;  %v794_v29 = vadd.f32 %v778_v47, %v761_v0  ;;  %v1053_v35 = vpop.eup %1052  ;;  %vm699_vm12 = vcmp.le.f32.partialorder %v683_v55, 0.0225  ;;  %vm702_vm13 = vcmp.le.f32.partialorder %v686_v31, 0.0225 }
 0x130   : > { %v671_v42 = vadd.f32 %v655_v33, %v555_v34  ;;  %v797_v38 = vadd.f32 %v781_v41, %v764_v26  ;;  %v1055_v44 = vpop.eup %1054  ;;  %v723_v30 = vmul.f32 0.6931472, %v1053_v35  ;;  %vm701_vm14 = vcmp.le.f32.partialorder %v685_v1, 0.0225 }
 0x131   : > { %810 = vst [vmem:[#allocation2 + $0x38] sm:$0xff] %v794_v29  ;;  %v729_v40 = vmul.f32 0.6931472, %v1055_v44 }
 0x132   : > { %v687_v51 = vadd.f32 1e-08, %v671_v42  ;;  %813 = vst [vmem:[#allocation2 + $0x50] sm:$0xff] %v797_v38  ;;  %v745_v53 = vsel %vm697_vm10, %v723_v30, 0.0 }
 0x133   : > { %v780_v57 = vmul.f32 %v1300_v2, %v745_v53  ;;  %v748_v59 = vsel %vm700_vm11, %v729_v40, 0.0 }
 0x134   : > { %1062 = vlog2.f32 %v687_v51  ;;  %v783_v49 = vmul.f32 %v1300_v2, %v748_v59  ;;  %vm703_vm15 = vcmp.le.f32.partialorder %v687_v51, 0.0225 }
 0x135   : > { %v1057_v39 = vpop.eup %1056  ;;  %v796_v5 = vadd.f32 %v780_v57, %v763_v52 }
 0x136   : > { %v1059_v45 = vpop.eup %1058  ;;  %v727_v36 = vmul.f32 0.6931472, %v1057_v39  ;;  %v799_v56 = vadd.f32 %v783_v49, %v766_v58 }
 0x137   : > { %v733_v20 = vmul.f32 0.6931472, %v1059_v45  ;;  %812 = vst [vmem:[#allocation2 + $0x48] sm:$0xff] %v796_v5 }
 0x138   : > { %v747_v10 = vsel %vm699_vm12, %v727_v36, 0.0  ;;  %815 = vst [vmem:[#allocation2 + $0x60] sm:$0xff] %v799_v56 }
 0x139   : > { %v1061_v6 = vpop.eup %1060  ;;  %v782_v25 = vmul.f32 %v1300_v2, %v747_v10  ;;  %v750_v37 = vsel %vm702_vm13, %v733_v20, 0.0 }
 0x13a   : > { %v731_v43 = vmul.f32 0.6931472, %v1061_v6  ;;  %v785_v62 = vmul.f32 %v1300_v2, %v750_v37 }
 0x13b   : > { %v798_v61 = vadd.f32 %v782_v25, %v765_v48 }
 0x13c   : > { %v749_v7 = vsel %vm701_vm14, %v731_v43, 0.0  ;;  %v801_v46 = vadd.f32 %v785_v62, %v768_v12 }
 0x13d   : > { %v784_v13 = vmul.f32 %v1300_v2, %v749_v7  ;;  %814 = vst [vmem:[#allocation2 + $0x58] sm:$0xff] %v798_v61 }
 0x13e   : > { %v1063_v15 = vpop.eup %1062  ;;  %817 = vst [vmem:[#allocation2 + $0x70] sm:$0xff] %v801_v46 }
 0x13f   : > { %v800_v14 = vadd.f32 %v784_v13, %v767_v3  ;;  %v735_v16 = vmul.f32 0.6931472, %v1063_v15 }
 0x141   : > { %816 = vst [vmem:[#allocation2 + $0x68] sm:$0xff] %v800_v14  ;;  %v751_v17 = vsel %vm703_vm15, %v735_v16, 0.0 }
 0x142   : > { %v786_v21 = vmul.f32 %v1300_v2, %v751_v17 }
 0x144   : > { %v802_v11 = vadd.f32 %v786_v21, %v769_v4 }
 0x146   : > { %818 = vst [vmem:[#allocation2 + $0x78] sm:$0xff] %v802_v11 }
 0x147 PF: > { %v822_v54 = vld [vmem:[#allocation2] sm:$0xff]  ;;  %v823_v9 = vld [vmem:[#allocation2 + $0x8] sm:$0xff]  ;;  %v824_v24 = vld [vmem:[#allocation2 + $0x10] sm:$0xff]  ;;  %vm863_vm0 = vcmask 0  }
 0x148   : > { %v838_v28 = vadd.f32 %v823_v9, %v822_v54  ;;  %v825_v55 = vld [vmem:[#allocation2 + $0x18] sm:$0xff]  ;;  %v826_v8 = vld [vmem:[#allocation2 + $0x20] sm:$0xff]  ;;  %v827_v60 = vld [vmem:[#allocation2 + $0x28] sm:$0xff] }
 0x149   : > { %v828_v23 = vld [vmem:[#allocation2 + $0x30] sm:$0xff]  ;;  %v829_v32 = vld [vmem:[#allocation2 + $0x38] sm:$0xff]  ;;  %v830_v0 = vld [vmem:[#allocation2 + $0x40] sm:$0xff] }
 0x14a   : > { %v839_v63 = vadd.f32 %v838_v28, %v824_v24  ;;  %v831_v2 = vld [vmem:[#allocation2 + $0x48] sm:$0xff]  ;;  %v832_v34 = vld [vmem:[#allocation2 + $0x50] sm:$0xff]  ;;  %v833_v26 = vld [vmem:[#allocation2 + $0x58] sm:$0xff] }
 0x14b   : > { %v834_v33 = vld [vmem:[#allocation2 + $0x60] sm:$0xff]  ;;  %v835_v29 = vld [vmem:[#allocation2 + $0x68] sm:$0xff]  ;;  %v836_v35 = vld [vmem:[#allocation2 + $0x70] sm:$0xff] }
 0x14c   : > { %v840_v18 = vadd.f32 %v839_v63, %v825_v55 }
 0x14d   : > { %v837_v44 = vld [vmem:[#allocation2 + $0x78] sm:$0xff] }
 0x14e   : > { %v841_v22 = vadd.f32 %v840_v18, %v826_v8 }
 0x150   : > { %v842_v31 = vadd.f32 %v841_v22, %v827_v60 }
 0x152   : > { %v843_v27 = vadd.f32 %v842_v31, %v828_v23 }
 0x154   : > { %v844_v50 = vadd.f32 %v843_v27, %v829_v32 }
 0x156   : > { %v845_v1 = vadd.f32 %v844_v50, %v830_v0 }
 0x158   : > { %v846_v47 = vadd.f32 %v845_v1, %v831_v2 }
 0x15a   : > { %v847_v19 = vadd.f32 %v846_v47, %v832_v34 }
 0x15c   : > { %v848_v41 = vadd.f32 %v847_v19, %v833_v26 }
 0x15e   : > { %v849_v42 = vadd.f32 %v848_v41, %v834_v33 }
 0x160   : > { %v850_v38 = vadd.f32 %v849_v42, %v835_v29 }
 0x162   : > { %v851_v30 = vadd.f32 %v850_v38, %v836_v35 }
 0x164   : > { %v852_v51 = vadd.f32 %v851_v30, %v837_v44 }
 0x166   : > { %853 = vadd.xlane.f32.xlu0 %v852_v51 }
 0x1f3   : > { %v854_v40 = vpop.xlane.xlu0 %853 }
 0x1f4   : > { %v855_v52 = vrot.slane %v854_v40, 4 }
 0x1f6   : > { %v856_v53 = vadd.f32 %v855_v52, %v854_v40 }
 0x1f8   : > { %v857_v57 = vrot.slane %v856_v53, 2 }
 0x1fa   : > { %v858_v58 = vadd.f32 %v857_v57, %v856_v53 }
 0x1fc   : > { %v859_v59 = vrot.slane %v858_v58, 1 }
 0x1fe   : > { %v860_v39 = vadd.f32 %v859_v59, %v858_v58 }
 0x200   : > { %977 = vpush %v860_v39 }
 0x231   : > { %s978_s20 = spop %977 }
 0x232   : > { %v862_v49 = vstv %s978_s20 }
 0x233   : > { %864 = vst.msk [vmem:[%s257_s23] sm:$0x1] %vm863_vm0, %v862_v49 }
 0x234 PF: > { %s29_s9 = sadd.s32 1, %s1140_s9   ;;  %s1488_s6 = smov %s1132_s8 }
 0x235   : > { %p26_p11 = scmp.ge.s32.totalorder %s29_s9, 6   ;;  %s1489_s7 = smov %s1136_s2 }
 0x236   : > { %s1490_s8 = smov %s1493_s10  ;;  %s1491_s2 = smov %s1497_s11 }
 0x237   :  { %28 = sbr.rel (!%p26_p11) target bundleno = 38 (0x26), region = 73 }

</bundles_post_ra>
